<compile_context>
chip_gen: v6e
topology: v6e:2x2x1
jax: 0.10.0
libtpu: 0.0.40
codegen_flags: <defaults>
</compile_context>

<pallas_src>
import functools

import jax
import jax.numpy as jnp
from jax.experimental import pallas as pl
from jax.experimental.pallas import tpu as pltpu

_VMEM_LIMIT = 32 * 1024 * 1024  # conservative scoped-VMEM cap, safe on v5e/v6e/v7x


def _round_up(n, m=128):
    return ((n + m - 1) // m) * m


def _pad_to(a, shape):
    pads = [(0, t - s) for s, t in zip(a.shape, shape)]
    return jnp.pad(a, pads)


def _pick_tile(m):
    for t in (512, 256, 128, 64, 32, 16, 8):
        if m % t == 0:
            return t
    return m


# ---------------------------------------------------------------------------
# Kernel 1: fused (bf16 matmul -> f32 folded-BN scale/bias -> optional SiLU),
# tiled over M.  Used for: stem conv (via im2col), 1x1 expand convs, conv_head
# and the final bias-free 1x1 conv (bn=False skips the FMA).
# ---------------------------------------------------------------------------
def _matmul_bn_act_kernel(*refs, act, bn):
    if bn:
        x_ref, w_ref, s_ref, b_ref, o_ref = refs
    else:
        x_ref, w_ref, o_ref = refs
    y = jnp.dot(x_ref[...], w_ref[...], preferred_element_type=jnp.float32)
    if bn:
        y = y * s_ref[...] + b_ref[...]
    if act:
        y = y * jax.nn.sigmoid(y)  # SiLU (f32 epilogue)
    o_ref[...] = y.astype(o_ref.dtype)


def matmul_bn_act(x, w, scale=None, bias=None, act=True, out_dtype=jnp.bfloat16):
    M, K = x.shape
    Kw, N = w.shape
    assert K == Kw
    bn = scale is not None
    tm = _pick_tile(M)

    in_specs = [
        pl.BlockSpec((tm, K), lambda i: (i, 0)),
        pl.BlockSpec((K, N), lambda i: (0, 0)),
    ]
    args = [x.astype(jnp.bfloat16), w.astype(jnp.bfloat16)]
    if bn:
        in_specs += [
            pl.BlockSpec((1, N), lambda i: (0, 0)),
            pl.BlockSpec((1, N), lambda i: (0, 0)),
        ]
        args += [scale.reshape(1, N).astype(jnp.float32),
                 bias.reshape(1, N).astype(jnp.float32)]

    return pl.pallas_call(
        functools.partial(_matmul_bn_act_kernel, act=act, bn=bn),
        out_shape=jax.ShapeDtypeStruct((M, N), out_dtype),
        grid=(M // tm,),
        in_specs=in_specs,
        out_specs=pl.BlockSpec((tm, N), lambda i: (i, 0)),
        compiler_params=pltpu.CompilerParams(
            dimension_semantics=("parallel",),
            vmem_limit_bytes=_VMEM_LIMIT),
    )(*args)


# ---------------------------------------------------------------------------
# Kernel 2: depthwise 3x3 conv + BN + SiLU.  stride=1 reads a symmetric-padded
# image; stride=2 reads a (2,2) parity-plane decomposition so only the stride-2
# output positions are ever computed or stored.
# ---------------------------------------------------------------------------
def _dw_conv_bn_silu_kernel(x_ref, w_ref, s_ref, b_ref, o_ref, *, Ho, Wo, C, stride):
    if stride == 1:
        x = x_ref[0].astype(jnp.float32)  # (Ho+2, Wo+2, C)

        def tap(kh, kw):
            return x[kh:kh + Ho, kw:kw + Wo, :]
    else:
        # parity planes of the padded input: planes[a][b][i,j] = xp[2i+a, 2j+b]
        planes = [[x_ref[0, a, b].astype(jnp.float32) for b in range(2)]
                  for a in range(2)]  # each (Ho+1, Wo+1, C)

        def tap(kh, kw):
            p = planes[kh % 2][kw % 2]
            return p[kh // 2:kh // 2 + Ho, kw // 2:kw // 2 + Wo, :]

    acc = jnp.zeros((Ho, Wo, C), jnp.float32)
    for kh in range(3):
        for kw in range(3):
            acc = acc + tap(kh, kw) * w_ref[kh, kw]  # (1,1,C) broadcast
    y = acc * s_ref[...] + b_ref[...]
    y = y * jax.nn.sigmoid(y)
    o_ref[0] = y.astype(o_ref.dtype)


def dw_conv_bn_silu(x, w, scale, bias, stride=1):
    N, H, W, C = x.shape
    Ho, Wo = H // stride, W // stride
    xp = jnp.pad(x, ((0, 0), (1, 1), (1, 1), (0, 0)))

    if stride == 2:
        # (N, 2, 2, Ho+1, Wo+1, C): the four row/col parity planes of xp.
        xin = jnp.stack(
            [jnp.stack([xp[:, a::2, b::2, :] for b in (0, 1)], axis=1)
             for a in (0, 1)], axis=1)
        in_block = (1, 2, 2, Ho + 1, Wo + 1, C)
        in_map = lambda n: (n, 0, 0, 0, 0, 0)
    else:
        xin = xp
        in_block = (1, H + 2, W + 2, C)
        in_map = lambda n: (n, 0, 0, 0)

    w5 = w.reshape(3, 3, 1, 1, C).astype(jnp.float32)
    scale = scale.reshape(1, 1, C).astype(jnp.float32)
    bias = bias.reshape(1, 1, C).astype(jnp.float32)

    return pl.pallas_call(
        functools.partial(_dw_conv_bn_silu_kernel, Ho=Ho, Wo=Wo, C=C, stride=stride),
        out_shape=jax.ShapeDtypeStruct((N, Ho, Wo, C), jnp.bfloat16),
        grid=(N,),
        in_specs=[
            pl.BlockSpec(in_block, in_map),
            pl.BlockSpec((3, 3, 1, 1, C), lambda n: (0, 0, 0, 0, 0)),
            pl.BlockSpec((1, 1, C), lambda n: (0, 0, 0)),
            pl.BlockSpec((1, 1, C), lambda n: (0, 0, 0)),
        ],
        out_specs=pl.BlockSpec((1, Ho, Wo, C), lambda n: (n, 0, 0, 0)),
        compiler_params=pltpu.CompilerParams(
            dimension_semantics=("parallel",),
            vmem_limit_bytes=_VMEM_LIMIT),
    )(xin.astype(jnp.bfloat16), w5, scale, bias)


# ---------------------------------------------------------------------------
# Kernel 3: Squeeze-and-Excite gate only: global avg pool over HW, reduce FC +
# SiLU, expand FC + sigmoid.  Emits the (N, 1, C) gate; the rescale itself is
# fused into the projection matmul (kernel 4) to avoid an HBM round trip.
# ---------------------------------------------------------------------------
def _se_scale_kernel(x_ref, w1_ref, b1_ref, w2_ref, b2_ref, o_ref):
    x = x_ref[0].astype(jnp.float32)                 # (HW, C)
    pooled = jnp.mean(x, axis=0, keepdims=True)      # (1, C)
    h = jnp.dot(pooled, w1_ref[...], preferred_element_type=jnp.float32) + b1_ref[...]
    h = h * jax.nn.sigmoid(h)
    s = jnp.dot(h, w2_ref[...], preferred_element_type=jnp.float32) + b2_ref[...]
    o_ref[0] = jax.nn.sigmoid(s)


def se_scale(y, w1, b1, w2, b2):
    N, H, W, C = y.shape
    Cse = w1.shape[1]
    yf = y.reshape(N, H * W, C)
    return pl.pallas_call(
        _se_scale_kernel,
        out_shape=jax.ShapeDtypeStruct((N, 1, C), jnp.float32),
        grid=(N,),
        in_specs=[
            pl.BlockSpec((1, H * W, C), lambda n: (n, 0, 0)),
            pl.BlockSpec((C, Cse), lambda n: (0, 0)),
            pl.BlockSpec((1, Cse), lambda n: (0, 0)),
            pl.BlockSpec((Cse, C), lambda n: (0, 0)),
            pl.BlockSpec((1, C), lambda n: (0, 0)),
        ],
        out_specs=pl.BlockSpec((1, 1, C), lambda n: (n, 0, 0)),
        compiler_params=pltpu.CompilerParams(
            dimension_semantics=("parallel",),
            vmem_limit_bytes=_VMEM_LIMIT),
    )(yf, w1.astype(jnp.float32), b1.reshape(1, Cse).astype(jnp.float32),
      w2.astype(jnp.float32), b2.reshape(1, C).astype(jnp.float32))


# ---------------------------------------------------------------------------
# Kernel 4: projection 1x1 conv + BN with the SE channel gate fused in
# (y = (x * se) @ W * scale + bias), tiled over (batch, M-rows).
# ---------------------------------------------------------------------------
def _proj_fused_kernel(x_ref, se_ref, w_ref, s_ref, b_ref, o_ref):
    x = x_ref[0].astype(jnp.float32) * se_ref[0]     # (TM, K) * (1, K)
    y = jnp.dot(x.astype(jnp.bfloat16), w_ref[...],
                preferred_element_type=jnp.float32)
    y = y * s_ref[...] + b_ref[...]
    o_ref[0] = y.astype(o_ref.dtype)


def project_bn_fused_se(y, se_s, w, scale, bias):
    N, H, W, K = y.shape
    Nout = w.shape[1]
    M = H * W
    tm = _pick_tile(M)
    yf = y.reshape(N, M, K).astype(jnp.bfloat16)
    out = pl.pallas_call(
        _proj_fused_kernel,
        out_shape=jax.ShapeDtypeStruct((N, M, Nout), jnp.bfloat16),
        grid=(N, M // tm),
        in_specs=[
            pl.BlockSpec((1, tm, K), lambda n, m: (n, m, 0)),
            pl.BlockSpec((1, 1, K), lambda n, m: (n, 0, 0)),
            pl.BlockSpec((K, Nout), lambda n, m: (0, 0)),
            pl.BlockSpec((1, Nout), lambda n, m: (0, 0)),
            pl.BlockSpec((1, Nout), lambda n, m: (0, 0)),
        ],
        out_specs=pl.BlockSpec((1, tm, Nout), lambda n, m: (n, m, 0)),
        compiler_params=pltpu.CompilerParams(
            dimension_semantics=("parallel", "parallel"),
            vmem_limit_bytes=_VMEM_LIMIT),
    )(yf, se_s, w.astype(jnp.bfloat16),
      scale.reshape(1, Nout).astype(jnp.float32),
      bias.reshape(1, Nout).astype(jnp.float32))
    return out.reshape(N, H, W, Nout)


# ---------------------------------------------------------------------------
# Plain-JAX glue
# ---------------------------------------------------------------------------
def im2col(x, kh, kw, stride, pad):
    # x: (N, H, W, C) -> (N*Ho*Wo, kh*kw*C) with K ordered as (tap_h, tap_w, cin)
    x = jnp.pad(x, ((0, 0), (pad, pad), (pad, pad), (0, 0)))
    N, Hp, Wp, C = x.shape
    Ho = (Hp - kh) // stride + 1
    Wo = (Wp - kw) // stride + 1
    patches = []
    for i in range(kh):
        for j in range(kw):
            patches.append(
                x[:, i:i + (Ho - 1) * stride + 1:stride,
                     j:j + (Wo - 1) * stride + 1:stride, :])
    cols = jnp.concatenate(patches, axis=-1)
    return cols.reshape(N * Ho * Wo, kh * kw * C), (N, Ho, Wo)


def mbconv(x, p):
    N, H, W, _ = x.shape
    cin, cout, stride = p["cin"], p["cout"], p["stride"]
    # expand (1x1 conv + BN + SiLU)
    cmid_p = p["exp_w"].shape[1]
    y = matmul_bn_act(x.reshape(N * H * W, -1), p["exp_w"],
                      p["exp_scale"], p["exp_bias"], act=True)
    y = y.reshape(N, H, W, cmid_p)
    # depthwise 3x3 + BN + SiLU (stride-2 positions computed directly)
    y = dw_conv_bn_silu(y, p["dw_w"], p["dw_scale"], p["dw_bias"], stride=stride)
    # squeeze-and-excite gate (rescale fused into the projection below)
    s = se_scale(y, p["se_w1"], p["se_b1"], p["se_w2"], p["se_b2"])
    # project (1x1 conv + BN, no activation) with SE gate fused
    z = project_bn_fused_se(y, s, p["proj_w"], p["proj_scale"], p["proj_bias"])
    if stride == 1 and cin == cout:
        z = z + x  # residual (drop_path is identity at inference)
    return z


def effnet_forward(x_nchw, params):
    x = jnp.transpose(x_nchw, (0, 2, 3, 1)).astype(jnp.float32)  # -> NHWC
    # stem: conv3x3 s2 + BN + SiLU (im2col in host JAX, matmul in Pallas)
    cols, (N, Ho, Wo) = im2col(x, 3, 3, stride=2, pad=1)
    y = matmul_bn_act(cols, params["stem_w"], params["stem_scale"],
                      params["stem_bias"], act=True)
    x = y.reshape(N, Ho, Wo, -1)
    # MBConv blocks
    for blk in params["blocks"]:
        x = mbconv(x, blk)
    # conv_head: 1x1 conv + BN + SiLU
    N, H, W, C = x.shape
    y = matmul_bn_act(x.reshape(N * H * W, C), params["head_w"],
                      params["head_scale"], params["head_bias"], act=True)
    x = y.reshape(N, H, W, -1)
    # final 1x1 conv, bias=False, no BN, no activation -> 512 channels (f32 out)
    N, H, W, C = x.shape
    y = matmul_bn_act(x.reshape(N * H * W, C), params["final_w"],
                      scale=None, bias=None, act=False, out_dtype=jnp.float32)
    x = y.reshape(N, H, W, -1)
    return jnp.transpose(x, (0, 3, 1, 2))  # back to NCHW


# ---------------------------------------------------------------------------
# Deterministic synthetic parameter init (folded inference BN), zero-padded so
# every channel dimension is a multiple of 128 (lane-dense layout).
# ---------------------------------------------------------------------------
def make_params(key):
    stem_out, head_out, final_out = 16, 128, 512
    # (cin, cmid, cout, stride, c_se)
    blocks_cfg = [(16, 64, 24, 1, 4), (24, 96, 32, 2, 6), (32, 128, 32, 1, 8)]
    keys = iter(jax.random.split(key, 256))
    nk = lambda: next(keys)

    def conv_w(shape):
        return 0.1 * jax.random.normal(nk(), shape, jnp.float32)

    def bn(c, eps=1e-3):
        gamma = 1.0 + 0.1 * jax.random.normal(nk(), (c,), jnp.float32)
        beta = 0.1 * jax.random.normal(nk(), (c,), jnp.float32)
        mean = 0.1 * jax.random.normal(nk(), (c,), jnp.float32)
        var = 1.0 + 0.1 * jnp.abs(jax.random.normal(nk(), (c,), jnp.float32))
        scale = gamma / jnp.sqrt(var + eps)
        bias = beta - mean * scale
        return scale, bias

    p = {}
    so = _round_up(stem_out)
    p["stem_w"] = _pad_to(conv_w((3, 3, 3, stem_out)).reshape(27, stem_out), (27, so))
    ss, sb = bn(stem_out)
    p["stem_scale"], p["stem_bias"] = _pad_to(ss, (so,)), _pad_to(sb, (so,))

    p["blocks"] = []
    for (cin, cmid, cout, stride, cse) in blocks_cfg:
        cin_p, cmid_p = _round_up(cin), _round_up(cmid)
        cout_p, cse_p = _round_up(cout), _round_up(cse)
        b = {"stride": stride, "cin": cin, "cout": cout}
        b["exp_w"] = _pad_to(conv_w((cin, cmid)), (cin_p, cmid_p))
        es, eb = bn(cmid)
        b["exp_scale"], b["exp_bias"] = _pad_to(es, (cmid_p,)), _pad_to(eb, (cmid_p,))
        b["dw_w"] = _pad_to(conv_w((3, 3, cmid)), (3, 3, cmid_p))
        dws, dwb = bn(cmid)
        b["dw_scale"], b["dw_bias"] = _pad_to(dws, (cmid_p,)), _pad_to(dwb, (cmid_p,))
        b["se_w1"] = _pad_to(conv_w((cmid, cse)), (cmid_p, cse_p))
        b["se_b1"] = _pad_to(0.1 * jax.random.normal(nk(), (cse,), jnp.float32), (cse_p,))
        b["se_w2"] = _pad_to(conv_w((cse, cmid)), (cse_p, cmid_p))
        b["se_b2"] = _pad_to(0.1 * jax.random.normal(nk(), (cmid,), jnp.float32), (cmid_p,))
        b["proj_w"] = _pad_to(conv_w((cmid, cout)), (cmid_p, cout_p))
        ps, pb = bn(cout)
        b["proj_scale"], b["proj_bias"] = _pad_to(ps, (cout_p,)), _pad_to(pb, (cout_p,))
        p["blocks"].append(b)

    last_cout = blocks_cfg[-1][2]
    ho = _round_up(head_out)
    p["head_w"] = _pad_to(conv_w((last_cout, head_out)), (_round_up(last_cout), ho))
    hs, hb = bn(head_out)
    p["head_scale"], p["head_bias"] = _pad_to(hs, (ho,)), _pad_to(hb, (ho,))
    p["final_w"] = _pad_to(conv_w((head_out, final_out)), (ho, final_out))
    return p


if __name__ == "__main__":
    key = jax.random.PRNGKey(0)
    kx, kp = jax.random.split(key)
    x = jax.random.normal(kx, (2, 3, 16, 16), jnp.float32)  # NCHW, like PyTorch
    params = make_params(kp)
    out = effnet_forward(x, params)
    out = jax.block_until_ready(out)
    assert out.shape == (2, 512, 4, 4), out.shape
    assert bool(jnp.all(jnp.isfinite(out)))
    print("KERNEL_OK")
</pallas_src>

<mosaic_0001>
module attributes {stable_mosaic.version = 11 : i64} {
  func.func @_matmul_bn_act_kernel(%arg0: i32, %arg1: memref<128x27xbf16, #tpu.memory_space<vmem>>, %arg2: memref<27x128xbf16, #tpu.memory_space<vmem>>, %arg3: memref<1x128xf32, #tpu.memory_space<vmem>>, %arg4: memref<1x128xf32, #tpu.memory_space<vmem>>, %arg5: memref<128x128xbf16, #tpu.memory_space<vmem>>) attributes {dimension_semantics = [#tpu.dimension_semantics<parallel>], iteration_bounds = array<i64: 1>, scalar_prefetch = 0 : i64, scratch_operands = 0 : i64, tpu.core_type = #tpu.core_type<tc>, window_params = [{transform_indices = @transform_0, window_bounds = array<i64: 128, 27>}, {pipeline_mode = #tpu.pipeline_mode<synchronous>, transform_indices = @transform_1, window_bounds = array<i64: 27, 128>}, {pipeline_mode = #tpu.pipeline_mode<synchronous>, transform_indices = @transform_2, window_bounds = array<i64: 1, 128>}, {pipeline_mode = #tpu.pipeline_mode<synchronous>, transform_indices = @transform_3, window_bounds = array<i64: 1, 128>}, {transform_indices = @transform_4, window_bounds = array<i64: 128, 128>}]} {
    %c0 = arith.constant 0 : index
    %c0_0 = arith.constant 0 : index
    %0 = vector.load %arg1[%c0, %c0_0] : memref<128x27xbf16, #tpu.memory_space<vmem>>, vector<128x27xbf16>
    %c0_1 = arith.constant 0 : index
    %c0_2 = arith.constant 0 : index
    %1 = vector.load %arg2[%c0_1, %c0_2] : memref<27x128xbf16, #tpu.memory_space<vmem>>, vector<27x128xbf16>
    %cst = arith.constant dense<0.000000e+00> : vector<128x128xf32>
    %2 = tpu.matmul %0, %1, %cst {dimension_numbers = #tpu.dot_dimension_numbers<[1], [0], [0], [1], [0, 0, 1, 1], [], []>} : vector<128x27xbf16>, vector<27x128xbf16>, vector<128x128xf32> -> vector<128x128xf32>
    %c0_3 = arith.constant 0 : index
    %c0_4 = arith.constant 0 : index
    %3 = vector.load %arg3[%c0_3, %c0_4] : memref<1x128xf32, #tpu.memory_space<vmem>>, vector<1x128xf32>
    %4 = vector.broadcast %3 : vector<1x128xf32> to vector<128x128xf32>
    %5 = arith.mulf %2, %4 : vector<128x128xf32>
    %c0_5 = arith.constant 0 : index
    %c0_6 = arith.constant 0 : index
    %6 = vector.load %arg4[%c0_5, %c0_6] : memref<1x128xf32, #tpu.memory_space<vmem>>, vector<1x128xf32>
    %7 = vector.broadcast %6 : vector<1x128xf32> to vector<128x128xf32>
    %8 = arith.addf %5, %7 : vector<128x128xf32>
    %9 = arith.negf %8 : vector<128x128xf32>
    %10 = math.exp %9 : vector<128x128xf32>
    %cst_7 = arith.constant 1.000000e+00 : f32
    %11 = vector.broadcast %cst_7 : f32 to vector<128x128xf32>
    %12 = arith.addf %11, %10 : vector<128x128xf32>
    %13 = arith.divf %11, %12 : vector<128x128xf32>
    %14 = arith.mulf %8, %13 : vector<128x128xf32>
    %15 = arith.truncf %14 : vector<128x128xf32> to vector<128x128xbf16>
    %c0_8 = arith.constant 0 : index
    %c0_9 = arith.constant 0 : index
    %16 = vector.load %arg5[%c0_8, %c0_9] : memref<128x128xbf16, #tpu.memory_space<vmem>>, vector<128x128xbf16>
    tpu.vector_store %arg5[%c0_8, %c0_9], %15 {strides = array<i32>} : memref<128x128xbf16, #tpu.memory_space<vmem>>, vector<128x128xbf16>,
    return
  }
  func.func @transform_0(%arg0: i32) -> (i32, i32) {
    %c0_i32 = arith.constant 0 : i32
    %c0_i32_0 = arith.constant 0 : i32
    return %arg0, %c0_i32 : i32, i32
  }
  func.func @transform_1(%arg0: i32) -> (i32, i32) {
    %c0_i32 = arith.constant 0 : i32
    %c0_i32_0 = arith.constant 0 : i32
    %c0_i32_1 = arith.constant 0 : i32
    return %c0_i32, %c0_i32_0 : i32, i32
  }
  func.func @transform_2(%arg0: i32) -> (i32, i32) {
    %c0_i32 = arith.constant 0 : i32
    %c0_i32_0 = arith.constant 0 : i32
    %c0_i32_1 = arith.constant 0 : i32
    return %c0_i32, %c0_i32_0 : i32, i32
  }
  func.func @transform_3(%arg0: i32) -> (i32, i32) {
    %c0_i32 = arith.constant 0 : i32
    %c0_i32_0 = arith.constant 0 : i32
    %c0_i32_1 = arith.constant 0 : i32
    return %c0_i32, %c0_i32_0 : i32, i32
  }
  func.func @transform_4(%arg0: i32) -> (i32, i32) {
    %c0_i32 = arith.constant 0 : i32
    %c0_i32_0 = arith.constant 0 : i32
    return %arg0, %c0_i32 : i32, i32
  }
}

</mosaic_0001>

<bundles_post_ra>
// kernel: tpu_custom_call.1
= control target key start
LH: loop header
LB: loop body
LE: loop exit
PB: predicated region body
PF: predicated region fallthrough
CT: control target
= control target key end

     0   :  { %vm115_vm0 = vcmask 1044480   ;;  %vm116_vm1 = vcmask 1045504   ;;  %v722_v1 = vmov 65535   ;;  %vm90_vm2 = vcmask 220160   ;;  %s898_s0 = inlined_call_operand.vmem [shape: bf16[128,27], index: 0, kind: input, shape index: {}]   ;;  %s899_s1 = inlined_call_operand.vmem [shape: bf16[27,128], index: 1, kind: input, shape index: {}]   ;;  %s900_s2 = inlined_call_operand.vmem [shape: f32[1,128], index: 2, kind: input, shape index: {}]   ;;  %s901_s3 = inlined_call_operand.vmem [shape: f32[1,128], index: 3, kind: input, shape index: {}]   ;;  %s902_s4 = inlined_call_operand.hbm [shape: bf16[128,128], index: 4, kind: output, shape index: {}]  }
   0x1   :  { %v626_v0 = vld [vmem:[%s899_s1 + $0x8] sm:$0x3f]   ;;  %v117_v2 = vsel %vm115_vm0, 4294967295, %v722_v1  ;;  %v628_v3 = vld [vmem:[%s898_s0] sm:$0xff]  }
   0x2   :  { %v118_v4 = vsel %vm116_vm1, %v117_v2, 0  ;;  %v627_v6 = vld [vmem:[%s899_s1] sm:$0xff]   ;;  %602 = vmatprep.mubr.msk.bf16.mxu0 %vm90_vm2, %v628_v3  ;;  %v630_v8 = vld [vmem:[%s898_s0 + $0x8] sm:$0xff]  }
   0x3   :  { %v120_v5 = vand.u32 %v626_v0, %v118_v4  ;;  %v629_v7 = vld [vmem:[%s898_s0 + $0x20] sm:$0xff]   ;;  %v631_v9 = vld [vmem:[%s898_s0 + $0x28] sm:$0xff]  }
   0x4   :  { %610 = vmatprep.mubr.msk.bf16.mxu1 %vm90_vm2, %v629_v7 }
   0x5   :  { %598 = vmatprep.subr.bf16.mxu0 %v120_v5  ;;  %618 = vmatprep.subr.bf16.mxu1 %v120_v5 }
   0x6   :  { %599 = vmatpush3.bf16.msra.mxu0 %v120_v5  ;;  %620 = vmatpush3.bf16.msra.mxu1 %v120_v5 }
   0x7   :  { %600 = vmatprep.subr.bf16.mxu0 %v627_v6  ;;  %619 = vmatprep.subr.bf16.mxu1 %v627_v6 }
   0x8   :  { %9 = vsyncpa [#allocation3], 0  ;;  %v632_v10 = vld [vmem:[%s898_s0 + $0x10] sm:$0xff]   ;;  %v634_v12 = vld [vmem:[%s898_s0 + $0x18] sm:$0xff]  }
   0x9   :  { %v633_v11 = vld [vmem:[%s898_s0 + $0x30] sm:$0xff]   ;;  %v635_v13 = vld [vmem:[%s898_s0 + $0x38] sm:$0xff]   ;;  %v792_v14 = vld [vmem:[%s900_s2] ss:$0 sm:$0xff]  ;;  %s723_s0 = smov [#allocation2]  }
   0xa   :  { %601 = vmatpush3.bf16.msra.mxu0 %v627_v6  ;;  %621 = vmatpush3.bf16.msra.mxu1 %v627_v6  ;;  %v797_v16 = vld [vmem:[%s901_s3] ss:$0 sm:$0xff]  ;;  %s462_s2 = sshll.u32 %s723_s0, 4  ;;  %s463_s2 = int_to_ptr.vmem [resolvable:$true] %s462_s2 }
   0xb   :  { %s700_s3 = scalar_lea.vmem %s463_s2, 1024  ;;  %p705_p1 = scmp.lt.s32.totalorder %s463_s2, %s463_s2 }
   0xc   :  { %p701_p0 = scmp.ne.s32.totalorder %s463_s2, %s700_s3  ;;  %p706_p2 = scmp.lt.s32.totalorder %s700_s3, %s700_s3 }
   0xd   :  { %603 = vmatmul.mubr.msk.bf16.vlgmr.msra.gmra.mxu0 %vm90_vm2, %v630_v8  ;;  %611 = vmatmul.mubr.msk.bf16.vlgmr.msra.gmra.mxu1 %vm90_vm2, %v631_v9 }
   0xe   :  { %606 = vmatprep.mubr.msk.bf16.mxu0 %vm90_vm2, %v632_v10  ;;  %614 = vmatprep.mubr.msk.bf16.mxu1 %vm90_vm2, %v633_v11  ;;  %p707_p3 = por %p706_p2, %p705_p1 }
  0x10   :  { %p708_p4 = pnand %p707_p3, %p701_p0 }
  0x15   :  { %607 = vmatmul.mubr.msk.bf16.gmra.mxu0 %vm90_vm2, %v634_v12  ;;  %615 = vmatmul.mubr.msk.bf16.gmra.mxu1 %vm90_vm2, %v635_v13 }
  0xcd   :  { %v604_v15 = vpop.f32.mrf.mxu0  ;;  %v612_v17 = vpop.f32.mrf.mxu1 }
  0xce   :  { %v228_v18 = vmul.f32 %v604_v15, %v792_v14  ;;  %v236_v19 = vmul.f32 %v612_v17, %v792_v14 }
  0xcf   :  { %v156_v20 = vpop.f32.mrf.mxu0  ;;  %v188_v21 = vpop.f32.mrf.mxu1 }
  0xd0   :  { %v802_v22 = vadd.f32 %v797_v16, %v228_v18  ;;  %v805_v23 = vadd.f32 %v797_v16, %v236_v19  ;;  %v226_v24 = vmul.f32 %v792_v14, %v156_v20  ;;  %v234_v25 = vmul.f32 %v792_v14, %v188_v21 }
  0xd1   :  { %v605_v26 = vpop.f32.mrf.mxu0  ;;  %v613_v27 = vpop.f32.mrf.mxu1 }
  0xd2   :  { %v495_v28 = vmul.f32 -1.442695, %v802_v22  ;;  %v503_v29 = vmul.f32 -1.442695, %v805_v23  ;;  %v812_v30 = vadd.f32 %v797_v16, %v226_v24  ;;  %v815_v31 = vadd.f32 %v797_v16, %v234_v25 }
  0xd3   :  { %v229_v32 = vmul.f32 %v605_v26, %v792_v14  ;;  %v237_v33 = vmul.f32 %v613_v27, %v792_v14  ;;  %v159_v34 = vpop.f32.mrf.mxu0  ;;  %v191_v35 = vpop.f32.mrf.mxu1 }
  0xd4   :  { %636 = vpow2.f32 %v495_v28  ;;  %v493_v36 = vmul.f32 -1.442695, %v812_v30  ;;  %v501_v37 = vmul.f32 -1.442695, %v815_v31  ;;  %v227_v38 = vmul.f32 %v792_v14, %v159_v34 }
  0xd5   :  { %638 = vpow2.f32 %v503_v29  ;;  %v823_v39 = vadd.f32 %v797_v16, %v229_v32  ;;  %v826_v40 = vadd.f32 %v797_v16, %v237_v33  ;;  %v235_v41 = vmul.f32 %v792_v14, %v191_v35  ;;  %v608_v42 = vpop.f32.mrf.mxu0  ;;  %v616_v43 = vpop.f32.mrf.mxu1 }
  0xd6   :  { %640 = vpow2.f32 %v493_v36  ;;  %v830_v44 = vadd.f32 %v797_v16, %v227_v38  ;;  %v232_v45 = vmul.f32 %v608_v42, %v792_v14  ;;  %v240_v46 = vmul.f32 %v616_v43, %v792_v14 }
  0xd7   :  { %642 = vpow2.f32 %v501_v37  ;;  %v496_v47 = vmul.f32 -1.442695, %v823_v39  ;;  %v504_v48 = vmul.f32 -1.442695, %v826_v40  ;;  %v837_v49 = vadd.f32 %v797_v16, %v235_v41  ;;  %v172_v50 = vpop.f32.mrf.mxu0  ;;  %v204_v51 = vpop.f32.mrf.mxu1 }
  0xd8   :  { %v494_v52 = vmul.f32 -1.442695, %v830_v44  ;;  %v841_v53 = vadd.f32 %v797_v16, %v232_v45  ;;  %v844_v54 = vadd.f32 %v797_v16, %v240_v46  ;;  %v230_v55 = vmul.f32 %v792_v14, %v172_v50 }
  0xd9   :  { %644 = vpow2.f32 %v496_v47  ;;  %v502_v56 = vmul.f32 -1.442695, %v837_v49  ;;  %v238_v57 = vmul.f32 %v792_v14, %v204_v51  ;;  %v609_v58 = vpop.f32.mrf.mxu0  ;;  %v617_v59 = vpop.f32.mrf.mxu1 }
  0xda   :  { %646 = vpow2.f32 %v504_v48  ;;  %v499_v60 = vmul.f32 -1.442695, %v841_v53  ;;  %v507_v61 = vmul.f32 -1.442695, %v844_v54  ;;  %v852_v62 = vadd.f32 %v797_v16, %v230_v55 }
  0xdb   :  { %648 = vpow2.f32 %v494_v52  ;;  %v855_v63 = vadd.f32 %v797_v16, %v238_v57  ;;  %v233_v0 = vmul.f32 %v609_v58, %v792_v14  ;;  %v241_v1 = vmul.f32 %v617_v59, %v792_v14  ;;  %v175_v2 = vpop.f32.mrf.mxu0  ;;  %v207_v3 = vpop.f32.mrf.mxu1 }
  0xdc   :  { %650 = vpow2.f32 %v502_v56  ;;  %v497_v4 = vmul.f32 -1.442695, %v852_v62  ;;  %v231_v5 = vmul.f32 %v792_v14, %v175_v2  ;;  %v239_v6 = vmul.f32 %v792_v14, %v207_v3 }
  0xdd   :  { %652 = vpow2.f32 %v499_v60  ;;  %v505_v7 = vmul.f32 -1.442695, %v855_v63  ;;  %v864_v8 = vadd.f32 %v797_v16, %v233_v0  ;;  %v867_v9 = vadd.f32 %v797_v16, %v241_v1 }
  0xde   :  { %654 = vpow2.f32 %v507_v61  ;;  %v870_v10 = vadd.f32 %v797_v16, %v231_v5  ;;  %v876_v14 = vadd.f32 %v797_v16, %v239_v6 }
  0xdf   :  { %656 = vpow2.f32 %v497_v4  ;;  %v500_v11 = vmul.f32 -1.442695, %v864_v8  ;;  %v508_v12 = vmul.f32 -1.442695, %v867_v9 }
  0xe0   :  { %658 = vpow2.f32 %v505_v7  ;;  %v498_v13 = vmul.f32 -1.442695, %v870_v10  ;;  %v506_v25 = vmul.f32 -1.442695, %v876_v14 }
  0xe1   :  { %v637_v15 = vpop.eup %636  ;;  %660 = vpow2.f32 %v500_v11 }
  0xe2   :  { %v639_v17 = vpop.eup %638  ;;  %v315_v18 = vadd.f32 1.0, %v637_v15  ;;  %662 = vpow2.f32 %v508_v12 }
  0xe3   :  { %v641_v19 = vpop.eup %640  ;;  %v323_v20 = vadd.f32 1.0, %v639_v17  ;;  %664 = vpow2.f32 %v498_v13 }
  0xe4   :  { %v643_v21 = vpop.eup %642  ;;  %666 = vrcp.f32 %v315_v18  ;;  %v313_v24 = vadd.f32 1.0, %v641_v19 }
  0xe5   :  { %668 = vrcp.f32 %v323_v20  ;;  %v321_v26 = vadd.f32 1.0, %v643_v21 }
  0xe6   :  { %v645_v27 = vpop.eup %644  ;;  %670 = vrcp.f32 %v313_v24 }
  0xe7   :  { %v647_v28 = vpop.eup %646  ;;  %672 = vrcp.f32 %v321_v26  ;;  %v316_v16 = vadd.f32 1.0, %v645_v27 }
  0xe8   :  { %v649_v29 = vpop.eup %648  ;;  %v324_v32 = vadd.f32 1.0, %v647_v28  ;;  %674 = vpow2.f32 %v506_v25 }
  0xe9   :  { %v651_v33 = vpop.eup %650  ;;  %676 = vrcp.f32 %v316_v16  ;;  %v314_v34 = vadd.f32 1.0, %v649_v29 }
  0xea   :  { %v653_v35 = vpop.eup %652  ;;  %678 = vrcp.f32 %v324_v32  ;;  %v322_v36 = vadd.f32 1.0, %v651_v33 }
  0xeb   :  { %v655_v37 = vpop.eup %654  ;;  %680 = vrcp.f32 %v314_v34  ;;  %v319_v38 = vadd.f32 1.0, %v653_v35 }
  0xec   :  { %v657_v41 = vpop.eup %656  ;;  %682 = vrcp.f32 %v322_v36  ;;  %v327_v42 = vadd.f32 1.0, %v655_v37 }
  0xed   :  { %v659_v43 = vpop.eup %658  ;;  %v317_v45 = vadd.f32 1.0, %v657_v41  ;;  %684 = vrcp.f32 %v319_v38 }
  0xee   :  { %v661_v46 = vpop.eup %660  ;;  %686 = vrcp.f32 %v327_v42  ;;  %v325_v57 = vadd.f32 1.0, %v659_v43 }
  0xef   :  { %v663_v47 = vpop.eup %662  ;;  %v320_v48 = vadd.f32 1.0, %v661_v46  ;;  %688 = vrcp.f32 %v317_v45 }
  0xf0   :  { %v665_v50 = vpop.eup %664  ;;  %v328_v51 = vadd.f32 1.0, %v663_v47 }
  0xf1   :  { %v667_v52 = vpop.eup %666  ;;  %690 = vrcp.f32 %v320_v48  ;;  %v318_v55 = vadd.f32 1.0, %v665_v50 }
  0xf2   :  { %v669_v56 = vpop.eup %668  ;;  %692 = vrcp.f32 %v328_v51  ;;  %v363_v2 = vmul.f32 %v667_v52, %v802_v22 }
  0xf3   :  { %v671_v58 = vpop.eup %670  ;;  %694 = vrcp.f32 %v318_v55  ;;  %v371_v5 = vmul.f32 %v669_v56, %v805_v23 }
  0xf4   :  { %v673_v59 = vpop.eup %672  ;;  %696 = vrcp.f32 %v325_v57  ;;  %v361_v11 = vmul.f32 %v671_v58, %v812_v30 }
  0xf5   :  { %v675_v60 = vpop.eup %674  ;;  %v369_v15 = vmul.f32 %v673_v59, %v815_v31 }
  0xf6   :  { %v677_v61 = vpop.eup %676  ;;  %v326_v0 = vadd.f32 1.0, %v675_v60 }
  0xf7   :  { %v679_v1 = vpop.eup %678  ;;  %v364_v3 = vmul.f32 %v677_v61, %v823_v39 }
  0xf8   :  { %v681_v4 = vpop.eup %680  ;;  %v372_v6 = vmul.f32 %v679_v1, %v826_v40  ;;  %698 = vrcp.f32 %v326_v0 }
  0xf9   :  { %v683_v7 = vpop.eup %682  ;;  %v549_v12 = vpack.c.bf16 %v364_v3, %v363_v2  ;;  %v362_v13 = vmul.f32 %v681_v4, %v830_v44 }
  0xfa   :  { %v569_v17 = vpack.c.bf16 %v372_v6, %v371_v5  ;;  %v370_v18 = vmul.f32 %v683_v7, %v837_v49  ;;  %v685_v22 = vpop.eup %684 }
  0xfb   :  { %581 = vst [vmem:[#allocation2 + $0x8] sm:$0xff] %v549_v12   ;;  %v544_v39 = vpack.c.bf16 %v362_v13, %v361_v11  ;;  %v687_v19 = vpop.eup %686  ;;  %v367_v30 = vmul.f32 %v685_v22, %v841_v53 }
  0xfc   :  { %585 = vst [vmem:[#allocation2 + $0x28] sm:$0xff] %v569_v17   ;;  %v564_v23 = vpack.c.bf16 %v370_v18, %v369_v15  ;;  %v689_v20 = vpop.eup %688  ;;  %v375_v31 = vmul.f32 %v687_v19, %v844_v54 }
  0xfd   :  { %545 = vst [vmem:[#allocation2] sm:$0xff] %v544_v39   ;;  %v365_v25 = vmul.f32 %v689_v20, %v852_v62 }
  0xfe   :  { %v691_v40 = vpop.eup %690  ;;  %584 = vst [vmem:[#allocation2 + $0x20] sm:$0xff] %v564_v23  }
  0xff   :  { %v693_v21 = vpop.eup %692  ;;  %v368_v44 = vmul.f32 %v691_v40, %v864_v8 }
 0x100   :  { %v695_v24 = vpop.eup %694  ;;  %v376_v49 = vmul.f32 %v693_v21, %v867_v9 }
 0x101   :  { %v559_v26 = vpack.c.bf16 %v368_v44, %v367_v30  ;;  %v366_v27 = vmul.f32 %v695_v24, %v870_v10  ;;  %v697_v16 = vpop.eup %696 }
 0x102   :  { %v579_v28 = vpack.c.bf16 %v376_v49, %v375_v31  ;;  %v373_v8 = vmul.f32 %v697_v16, %v855_v63 }
 0x103   :  { %583 = vst [vmem:[#allocation2 + $0x18] sm:$0xff] %v559_v26   ;;  %v554_v29 = vpack.c.bf16 %v366_v27, %v365_v25 }
 0x104   :  { %587 = vst [vmem:[#allocation2 + $0x38] sm:$0xff] %v579_v28  }
 0x105   :  { %v699_v53 = vpop.eup %698  ;;  %582 = vst [vmem:[#allocation2 + $0x10] sm:$0xff] %v554_v29  }
 0x106   :  { %v374_v54 = vmul.f32 %v699_v53, %v876_v14 }
 0x108   :  { %v574_v9 = vpack.c.bf16 %v374_v54, %v373_v8 }
 0x10a   :  { %586 = vst [vmem:[#allocation2 + $0x30] sm:$0xff] %v574_v9  }
 0x10b   :  { %711 = shalt.err (!%p708_p4)
}
 0x10c   :  { %s724_s12 = smov 64   ;;  %s725_s13 = smov 4  }
 0x10d   :  { %468 = dma.vmem_to_hbm [thread:$0]  %s463_s2, 1024, %s902_s4, [#allocation3], %s724_s12, %s724_s12, %s725_s13  }
 0x10e   :  { %720 = dma.done.wait [#allocation3], 1024  }
 0x10f   :  { %721 = vsyncadd [#allocation3], 4294966272 }
 0x110   :  { %472 = vsyncpa [#allocation3], 1 }

</bundles_post_ra>
